<compile_context>
chip_gen: v7x
topology: tpu7x:2x2x1
jax: 0.10.0
libtpu: 0.0.40
codegen_flags: <defaults>
</compile_context>

<pallas_src>
import jax
import jax.numpy as jnp
from jax import lax
from jax.experimental import pallas as pl
from jax.experimental.pallas import tpu as pltpu

NEG_SLOPE = 0.01  # PyTorch F.leaky_relu default

_X_TILE_BYTES = 4 * 1024 * 1024   # target size of ONE x VMEM buffer (double-buffered)
_MIN_SPLIT_ROWS = 1024            # force >=2 grid steps (v7x: 2 TCs) above this B


def _leaky_relu(x):
    return jnp.where(x >= 0, x, NEG_SLOPE * x)


def _round_up(n, m):
    return ((n + m - 1) // m) * m


def _cdiv(a, b):
    return (a + b - 1) // b


def net_kernel(x_ref, w1_ref, b1_ref, w2_ref, b2_ref, w3t_ref, b3t_ref, o_ref):
    # One (TB, in_dim) batch tile per grid step; weights/biases are VMEM
    # resident via constant index_maps.  Three chained MXU matmuls with VPU
    # leaky-relu epilogues; all accumulation / epilogue math in f32.
    x = x_ref[...]

    h1 = jnp.dot(x, w1_ref[...], preferred_element_type=jnp.float32) + b1_ref[...]
    h1 = _leaky_relu(h1)

    h2 = jnp.dot(h1, w2_ref[...], preferred_element_type=jnp.float32) + b2_ref[...]
    h2 = _leaky_relu(h2)

    # fc3 computed directly in transposed form:
    #   out_t[o, t] = sum_d w3t[o, d] * h2[t, d]        -> (out_dim, TB)
    # Both operands contract their last dim (trans-RHS matmul, same pattern
    # as attention QK^T) so no explicit transpose / relayout is needed, and
    # the store is a lane-dense (out_dim, TB) slab -> minimal HBM writeback.
    out_t = lax.dot_general(
        w3t_ref[...], h2, (((1,), (1,)), ((), ())),
        preferred_element_type=jnp.float32) + b3t_ref[...]
    o_ref[...] = out_t.astype(o_ref.dtype)


def net_forward(x, params, *, block_rows=None):
    """3-layer MLP forward pass as a single batch-tiled Pallas kernel.

    x is consumed in whatever dtype the caller provides (f32 or bf16); no
    wrapper-side pad/cast passes over x are performed.  The kernel output is
    f32 (accumulation dtype).  block_rows optionally caps the batch tile;
    by default the tile is derived from in_dim against a ~4 MiB-per-buffer
    VMEM budget (safe on v5e/v6e 128 MiB and v7x 64 MiB VMEM).
    """
    w1, b1, w2, b2, w3, b3 = params
    B, in_dim = x.shape
    d1 = w1.shape[1]
    d2 = w2.shape[1]
    out_dim = w3.shape[1]
    itemsize = jnp.dtype(x.dtype).itemsize

    # ---- batch-tile sizing (items 2/3/6/7) -------------------------------
    # Cap so one x buffer is ~<=4 MiB; keep it a multiple of 128 so the
    # transposed output block stays lane-dense and no tile is fully OOB.
    tb_cap = max(128, (_X_TILE_BYTES // (in_dim * itemsize)) // 128 * 128)
    if block_rows is not None:
        tb_cap = min(tb_cap, max(128, _round_up(block_rows, 128)))

    num_tiles = _cdiv(B, tb_cap)
    if num_tiles == 1 and B >= _MIN_SPLIT_ROWS:
        num_tiles = 2                      # give v7x's 2nd TensorCore work
    rows = _cdiv(B, num_tiles)
    if num_tiles > 1:
        TB = _round_up(rows, 128)          # lane-dense transposed store
    else:
        TB = _round_up(rows, 8)            # single block == full array dims
    B_pad = TB * num_tiles                 # padding bounded by ~127*num_tiles rows

    # fc3 parameters in transposed orientation (tiny, done once per call).
    w3t = jnp.transpose(w3)                # (out_dim, d2)
    b3t = jnp.transpose(b3)                # (out_dim, 1)

    def resident(a):
        # Full-array block, constant block index -> stays in VMEM across the
        # whole batch grid.
        return pl.BlockSpec(a.shape, lambda i: (0, 0))

    in_specs = [
        pl.BlockSpec((TB, in_dim), lambda i: (i, 0)),   # x: batch-tiled, dbl-buffered
        resident(w1), resident(b1),
        resident(w2), resident(b2),
        resident(w3t), resident(b3t),
    ]
    out_spec = pl.BlockSpec((out_dim, TB), lambda i: (0, i))

    # ---- VMEM footprint -> compiler limit (item 3) -----------------------
    w_bytes = sum(int(a.size) * a.dtype.itemsize
                  for a in (w1, b1, w2, b2, w3t, b3t))
    x_buf_bytes = TB * in_dim * itemsize
    out_buf_bytes = _round_up(out_dim, 8) * TB * 4
    vmem_need = 2 * x_buf_bytes + 2 * out_buf_bytes + w_bytes + (4 << 20)
    vmem_limit = int(min(max(vmem_need, 32 << 20), 56 << 20))

    flops = 2 * B * (in_dim * d1 + d1 * d2 + d2 * out_dim)
    bytes_accessed = int(x.size) * itemsize + w_bytes + B * out_dim * 4

    out_t = pl.pallas_call(
        net_kernel,
        out_shape=jax.ShapeDtypeStruct((out_dim, B_pad), jnp.float32),
        grid=(num_tiles,),
        in_specs=in_specs,
        out_specs=out_spec,
        compiler_params=pltpu.CompilerParams(
            dimension_semantics=("parallel",),   # shards batch tiles over v7x's 2 TCs
            vmem_limit_bytes=vmem_limit,
        ),
        cost_estimate=pl.CostEstimate(
            flops=flops, transcendentals=0, bytes_accessed=bytes_accessed),
    )(x, w1, b1, w2, b2, w3t, b3t)

    # Un-pack: drop padded batch columns, back to (B, out_dim).  Tiny op.
    return out_t[:, :B].T


def init_params(key, in_dim, out_dim=2):
    """Deterministic synthetic parameters matching Net.__init__ shapes."""
    dim = max(in_dim // 8, out_dim * 8 * 2)
    d1 = dim // 4
    d2 = dim // 8

    keys = jax.random.split(key, 8)

    def linear(kw, kb, fan_in, fan_out):
        # Uniform(-1/sqrt(fan_in), 1/sqrt(fan_in)), like torch.nn.Linear.
        bound = 1.0 / jnp.sqrt(jnp.float32(fan_in))
        w = jax.random.uniform(kw, (fan_in, fan_out), jnp.float32, -bound, bound)
        b = jax.random.uniform(kb, (1, fan_out), jnp.float32, -bound, bound)
        return w, b

    w1, b1 = linear(keys[0], keys[1], in_dim, d1)
    w2, b2 = linear(keys[2], keys[3], d1, d2)
    # fc20 exists in __init__ but is unused in forward(); created for shape
    # fidelity only.
    _w20, _b20 = linear(keys[4], keys[5], d2, d2)
    w3, b3 = linear(keys[6], keys[7], d2, out_dim)
    return (w1, b1, w2, b2, w3, b3)


def reference_forward(x, params):
    """Pure-JAX reference for correctness checking."""
    w1, b1, w2, b2, w3, b3 = params
    h = _leaky_relu(x @ w1 + b1)
    h = _leaky_relu(h @ w2 + b2)
    return h @ w3 + b3


if __name__ == "__main__":
    key = jax.random.PRNGKey(0)
    k_x, k_p, k_x2 = jax.random.split(key, 3)

    IN_DIM = 128   # -> dim = max(16, 32) = 32; fc1: 128->8, fc2: 8->4, fc3: 4->2
    OUT_DIM = 2
    params = init_params(k_p, IN_DIM, OUT_DIM)

    # 1) Small single-tile case (block == full array dims).
    x_small = jax.random.normal(k_x, (8, IN_DIM), jnp.float32)
    ref_small = reference_forward(x_small, params)
    out_small = jax.block_until_ready(net_forward(x_small, params))
    assert out_small.shape == (8, OUT_DIM), out_small.shape
    assert jnp.allclose(out_small, ref_small, atol=1e-5, rtol=1e-5), "f32 small mismatch"

    # 2) Multi-tile case with a partial (masked) last x tile; exercises the
    #    2-step grid (both v7x TCs) and the packed transposed output store.
    x_big = jax.random.normal(k_x2, (1300, IN_DIM), jnp.float32)
    ref_big = reference_forward(x_big, params)
    out_big = jax.block_until_ready(net_forward(x_big, params))
    assert out_big.shape == (1300, OUT_DIM), out_big.shape
    assert jnp.allclose(out_big, ref_big, atol=1e-4, rtol=1e-4), "f32 big mismatch"

    # 3) bf16 activations supplied by the caller (no wrapper-side cast pass):
    #    halves the dominant x/w1 HBM traffic on every generation; MXU still
    #    accumulates in f32.  Loose tolerance check.
    x_bf16 = x_big.astype(jnp.bfloat16)
    params_bf16 = (params[0].astype(jnp.bfloat16),) + params[1:]
    out_bf16 = jax.block_until_ready(net_forward(x_bf16, params_bf16))
    ref_bf16 = reference_forward(x_bf16.astype(jnp.float32), params)
    assert out_bf16.shape == (1300, OUT_DIM), out_bf16.shape
    assert jnp.allclose(out_bf16, ref_bf16, atol=5e-2, rtol=5e-2), "bf16 mismatch"

    print("KERNEL_OK")
</pallas_src>

<mosaic_0001>
module attributes {stable_mosaic.version = 11 : i64} {
  func.func @net_kernel(%arg0: i32, %arg1: memref<8x128xf32, #tpu.memory_space<vmem>>, %arg2: memref<128x8xf32, #tpu.memory_space<vmem>>, %arg3: memref<1x8xf32, #tpu.memory_space<vmem>>, %arg4: memref<8x4xf32, #tpu.memory_space<vmem>>, %arg5: memref<1x4xf32, #tpu.memory_space<vmem>>, %arg6: memref<2x4xf32, #tpu.memory_space<vmem>>, %arg7: memref<2x1xf32, #tpu.memory_space<vmem>>, %arg8: memref<2x8xf32, #tpu.memory_space<vmem>>) attributes {dimension_semantics = [#tpu.dimension_semantics<parallel>], iteration_bounds = array<i64: 1>, scalar_prefetch = 0 : i64, scratch_operands = 0 : i64, tpu.core_type = #tpu.core_type<tc>, window_params = [{transform_indices = @transform_0, window_bounds = array<i64: 8, 128>}, {pipeline_mode = #tpu.pipeline_mode<synchronous>, transform_indices = @transform_1, window_bounds = array<i64: 128, 8>}, {pipeline_mode = #tpu.pipeline_mode<synchronous>, transform_indices = @transform_2, window_bounds = array<i64: 1, 8>}, {pipeline_mode = #tpu.pipeline_mode<synchronous>, transform_indices = @transform_3, window_bounds = array<i64: 8, 4>}, {pipeline_mode = #tpu.pipeline_mode<synchronous>, transform_indices = @transform_4, window_bounds = array<i64: 1, 4>}, {pipeline_mode = #tpu.pipeline_mode<synchronous>, transform_indices = @transform_5, window_bounds = array<i64: 2, 4>}, {pipeline_mode = #tpu.pipeline_mode<synchronous>, transform_indices = @transform_6, window_bounds = array<i64: 2, 1>}, {transform_indices = @transform_7, window_bounds = array<i64: 2, 8>}]} {
    %c0 = arith.constant 0 : index
    %c0_0 = arith.constant 0 : index
    %0 = vector.load %arg1[%c0, %c0_0] : memref<8x128xf32, #tpu.memory_space<vmem>>, vector<8x128xf32>
    %c0_1 = arith.constant 0 : index
    %c0_2 = arith.constant 0 : index
    %1 = vector.load %arg2[%c0_1, %c0_2] : memref<128x8xf32, #tpu.memory_space<vmem>>, vector<128x8xf32>
    %cst = arith.constant dense<0.000000e+00> : vector<8x8xf32>
    %2 = tpu.matmul %0, %1, %cst {dimension_numbers = #tpu.dot_dimension_numbers<[1], [0], [0], [1], [0, 0, 1, 1], [], []>} : vector<8x128xf32>, vector<128x8xf32>, vector<8x8xf32> -> vector<8x8xf32>
    %c0_3 = arith.constant 0 : index
    %c0_4 = arith.constant 0 : index
    %3 = vector.load %arg3[%c0_3, %c0_4] : memref<1x8xf32, #tpu.memory_space<vmem>>, vector<1x8xf32>
    %4 = vector.broadcast %3 : vector<1x8xf32> to vector<8x8xf32>
    %5 = arith.addf %2, %4 : vector<8x8xf32>
    %cst_5 = arith.constant 0.000000e+00 : f32
    %6 = vector.broadcast %cst_5 : f32 to vector<8x8xf32>
    %7 = arith.cmpf oge, %5, %6 : vector<8x8xf32>
    %cst_6 = arith.constant 0.00999999977 : f32
    %8 = vector.broadcast %cst_6 : f32 to vector<8x8xf32>
    %9 = arith.mulf %8, %5 : vector<8x8xf32>
    %10 = arith.select %7, %5, %9 : vector<8x8xi1>, vector<8x8xf32>
    %c0_7 = arith.constant 0 : index
    %c0_8 = arith.constant 0 : index
    %11 = vector.load %arg4[%c0_7, %c0_8] : memref<8x4xf32, #tpu.memory_space<vmem>>, vector<8x4xf32>
    %cst_9 = arith.constant dense<0.000000e+00> : vector<8x4xf32>
    %12 = tpu.matmul %10, %11, %cst_9 {dimension_numbers = #tpu.dot_dimension_numbers<[1], [0], [0], [1], [0, 0, 1, 1], [], []>} : vector<8x8xf32>, vector<8x4xf32>, vector<8x4xf32> -> vector<8x4xf32>
    %c0_10 = arith.constant 0 : index
    %c0_11 = arith.constant 0 : index
    %13 = vector.load %arg5[%c0_10, %c0_11] : memref<1x4xf32, #tpu.memory_space<vmem>>, vector<1x4xf32>
    %14 = vector.broadcast %13 : vector<1x4xf32> to vector<8x4xf32>
    %15 = arith.addf %12, %14 : vector<8x4xf32>
    %cst_12 = arith.constant 0.000000e+00 : f32
    %16 = vector.broadcast %cst_12 : f32 to vector<8x4xf32>
    %17 = arith.cmpf oge, %15, %16 : vector<8x4xf32>
    %cst_13 = arith.constant 0.00999999977 : f32
    %18 = vector.broadcast %cst_13 : f32 to vector<8x4xf32>
    %19 = arith.mulf %18, %15 : vector<8x4xf32>
    %20 = arith.select %17, %15, %19 : vector<8x4xi1>, vector<8x4xf32>
    %c0_14 = arith.constant 0 : index
    %c0_15 = arith.constant 0 : index
    %21 = vector.load %arg6[%c0_14, %c0_15] : memref<2x4xf32, #tpu.memory_space<vmem>>, vector<2x4xf32>
    %cst_16 = arith.constant dense<0.000000e+00> : vector<2x8xf32>
    %22 = tpu.matmul %21, %20, %cst_16 {dimension_numbers = #tpu.dot_dimension_numbers<[1], [1], [0], [0], [0, 0, 1, 0], [], []>} : vector<2x4xf32>, vector<8x4xf32>, vector<2x8xf32> -> vector<2x8xf32>
    %c0_17 = arith.constant 0 : index
    %c0_18 = arith.constant 0 : index
    %23 = vector.load %arg7[%c0_17, %c0_18] : memref<2x1xf32, #tpu.memory_space<vmem>>, vector<2x1xf32>
    %24 = vector.broadcast %23 : vector<2x1xf32> to vector<2x8xf32>
    %25 = arith.addf %22, %24 : vector<2x8xf32>
    %c0_19 = arith.constant 0 : index
    %c0_20 = arith.constant 0 : index
    %26 = vector.load %arg8[%c0_19, %c0_20] : memref<2x8xf32, #tpu.memory_space<vmem>>, vector<2x8xf32>
    tpu.vector_store %arg8[%c0_19, %c0_20], %25 {strides = array<i32>} : memref<2x8xf32, #tpu.memory_space<vmem>>, vector<2x8xf32>,
    return
  }
  func.func @transform_0(%arg0: i32) -> (i32, i32) {
    %c0_i32 = arith.constant 0 : i32
    %c0_i32_0 = arith.constant 0 : i32
    return %arg0, %c0_i32 : i32, i32
  }
  func.func @transform_1(%arg0: i32) -> (i32, i32) {
    %c0_i32 = arith.constant 0 : i32
    %c0_i32_0 = arith.constant 0 : i32
    %c0_i32_1 = arith.constant 0 : i32
    return %c0_i32, %c0_i32_0 : i32, i32
  }
  func.func @transform_2(%arg0: i32) -> (i32, i32) {
    %c0_i32 = arith.constant 0 : i32
    %c0_i32_0 = arith.constant 0 : i32
    %c0_i32_1 = arith.constant 0 : i32
    return %c0_i32, %c0_i32_0 : i32, i32
  }
  func.func @transform_3(%arg0: i32) -> (i32, i32) {
    %c0_i32 = arith.constant 0 : i32
    %c0_i32_0 = arith.constant 0 : i32
    %c0_i32_1 = arith.constant 0 : i32
    return %c0_i32, %c0_i32_0 : i32, i32
  }
  func.func @transform_4(%arg0: i32) -> (i32, i32) {
    %c0_i32 = arith.constant 0 : i32
    %c0_i32_0 = arith.constant 0 : i32
    %c0_i32_1 = arith.constant 0 : i32
    return %c0_i32, %c0_i32_0 : i32, i32
  }
  func.func @transform_5(%arg0: i32) -> (i32, i32) {
    %c0_i32 = arith.constant 0 : i32
    %c0_i32_0 = arith.constant 0 : i32
    %c0_i32_1 = arith.constant 0 : i32
    return %c0_i32, %c0_i32_0 : i32, i32
  }
  func.func @transform_6(%arg0: i32) -> (i32, i32) {
    %c0_i32 = arith.constant 0 : i32
    %c0_i32_0 = arith.constant 0 : i32
    %c0_i32_1 = arith.constant 0 : i32
    return %c0_i32, %c0_i32_0 : i32, i32
  }
  func.func @transform_7(%arg0: i32) -> (i32, i32) {
    %c0_i32 = arith.constant 0 : i32
    %c0_i32_0 = arith.constant 0 : i32
    return %c0_i32, %arg0 : i32, i32
  }
}

</mosaic_0001>

<bundles_post_ra>
// kernel: tpu_custom_call.1
= control target key start
LH: loop header
LB: loop body
LE: loop exit
PB: predicated region body
PF: predicated region fallthrough
CT: control target
= control target key end

     0   :  { %v434_v3 = vmov 0.0|0.0   ;;  %vm435_vm0 = vmmov 0   ;;  %v436_v6 = vmov 0.0   ;;  %s560_s0 = inlined_call_operand.vmem [shape: f32[8,128], index: 0, kind: input, shape index: {}]   ;;  %s561_s1 = inlined_call_operand.vmem [shape: f32[128,8], index: 1, kind: input, shape index: {}]   ;;  %s562_s2 = inlined_call_operand.vmem [shape: f32[1,8], index: 2, kind: input, shape index: {}]   ;;  %s563_s3 = inlined_call_operand.vmem [shape: f32[8,4], index: 3, kind: input, shape index: {}]   ;;  %s564_s4 = inlined_call_operand.vmem [shape: f32[1,4], index: 4, kind: input, shape index: {}]   ;;  %s565_s5 = inlined_call_operand.vmem [shape: f32[2,4], index: 5, kind: input, shape index: {}]   ;;  %s566_s6 = inlined_call_operand.vmem [shape: f32[2,1], index: 6, kind: input, shape index: {}]   ;;  %s567_s7 = inlined_call_operand.hbm [shape: f32[2,8], index: 7, kind: output, shape index: {}]  }
   0x1   :  { %v28_v0 = vld [vmem:[%s561_s1] sm:$0xff]  ;;  %v29_v1 = vld [vmem:[%s561_s1 + $0x8] sm:$0xff]  ;;  %v30_v2 = vld [vmem:[%s561_s1 + $0x10] sm:$0xff]  ;;  %380 = vmatprep.subr.bf16.mxu0 %v434_v3  ;;  %367 = vmatprep.mubr.msk.f32.mxu0 %vm435_vm0, %v436_v6 }
   0x2   :  { %v381_v4 = vpack.c.bf16 %v29_v1, %v28_v0  ;;  %v31_v5 = vld [vmem:[%s561_s1 + $0x18] sm:$0xff]  ;;  %370 = vmatprep.subr.mxu1 %v436_v6  ;;  %372 = vmatprep.mubr.msk.f32.mxu1 %vm435_vm0, %v436_v6  ;;  %v32_v8 = vld [vmem:[%s561_s1 + $0x20] sm:$0xff]  ;;  %v33_v9 = vld [vmem:[%s561_s1 + $0x28] sm:$0xff] }
   0x3   :  { %v384_v7 = vpack.c.bf16 %v31_v5, %v30_v2 }
   0x4   :  { %382 = vmatpush3.bf16.msra.mxu0 %v381_v4 }
   0x5   :  { %383 = vmatprep.subr.bf16.mxu0 %v434_v3 }
   0x6   :  { %12 = vsyncpa [#allocation3], 0  ;;  %v387_v10 = vpack.c.bf16 %v33_v9, %v32_v8  ;;  %v34_v11 = vld [vmem:[%s561_s1 + $0x30] sm:$0xff]  ;;  %v35_v12 = vld [vmem:[%s561_s1 + $0x38] sm:$0xff]  ;;  %vm132_vm2 = vcmask 64512   ;;  %v437_v35 = vmov 0  }
   0x7   :  { %v390_v13 = vpack.c.bf16 %v35_v12, %v34_v11  ;;  %v36_v14 = vld [vmem:[%s561_s1 + $0x40] sm:$0xff]  ;;  %v37_v15 = vld [vmem:[%s561_s1 + $0x48] sm:$0xff]  ;;  %v38_v17 = vld [vmem:[%s561_s1 + $0x50] sm:$0xff]  ;;  %409 = vset.pattern.permute.xlu0 %v437_v35  ;;  %vm216_vm4 = vcmask 31744   ;;  %vm293_vm5 = vcmask 58368  }
   0x8   :  { %385 = vmatpush3.bf16.msra.mxu0 %v384_v7  ;;  %v393_v16 = vpack.c.bf16 %v37_v15, %v36_v14  ;;  %v39_v18 = vld [vmem:[%s561_s1 + $0x58] sm:$0xff]  ;;  %v40_v20 = vld [vmem:[%s561_s1 + $0x60] sm:$0xff]  ;;  %v41_v21 = vld [vmem:[%s561_s1 + $0x68] sm:$0xff] }
   0x9   :  { %386 = vmatprep.subr.bf16.mxu0 %v434_v3  ;;  %v396_v19 = vpack.c.bf16 %v39_v18, %v38_v17  ;;  %v399_v22 = vpack.c.bf16 %v41_v21, %v40_v20  ;;  %v42_v23 = vld [vmem:[%s561_s1 + $0x70] sm:$0xff]  ;;  %v43_v24 = vld [vmem:[%s561_s1 + $0x78] sm:$0xff]  ;;  %v27_v26 = vld [vmem:[%s560_s0] sm:$0xff] }
   0xa   :  { %v402_v25 = vpack.c.bf16 %v43_v24, %v42_v23  ;;  %v124_v27 = vld [vmem:[%s563_s3] sm:$0xff] }
   0xb   :  { %371 = vmatpush3.msra.mxu1 %v124_v27  ;;  %v309_v28 = vld [vmem:[%s562_s2] ss:$0 sm:$0xff] }
   0xc   :  { %388 = vmatpush3.bf16.msra.mxu0 %v387_v10  ;;  %375 = vmatprep.subr.mxu1 %v436_v6  ;;  %v210_v34 = vld [vmem:[%s566_s6] sm:$0x3]  ;;  %s438_s6 = smov [#allocation2]  }
   0xd   :  { %389 = vmatprep.subr.bf16.mxu0 %v434_v3  ;;  %213 = vperm.xlu0 %409, %v210_v34   ;;  %v310_v36 = vld [vmem:[%s564_s4] ss:$0 sm:$0xff]  ;;  %s301_s18 = sshll.u32 %s438_s6, 4  ;;  %s302_s18 = int_to_ptr.vmem [resolvable:$true] %s301_s18 }
   0xe   :  { %v209_v42 = vld [vmem:[%s565_s5] sm:$0x3]  ;;  %s410_s4 = scalar_lea.vmem %s302_s18, 32  ;;  %p415_p1 = scmp.lt.s32.totalorder %s302_s18, %s302_s18 }
   0xf   :  { %p411_p0 = scmp.ne.s32.totalorder %s302_s18, %s410_s4  ;;  %p416_p2 = scmp.lt.s32.totalorder %s410_s4, %s410_s4 }
  0x10   :  { %391 = vmatpush3.bf16.msra.mxu0 %v390_v13 }
  0x11   :  { %392 = vmatprep.subr.bf16.mxu0 %v434_v3  ;;  %p417_p3 = por %p416_p2, %p415_p1 }
  0x13   :  { %p418_p4 = pnand %p417_p3, %p411_p0 }
  0x14   :  { %394 = vmatpush3.bf16.msra.mxu0 %v393_v16 }
  0x15   :  { %395 = vmatprep.subr.bf16.mxu0 %v434_v3 }
  0x18   :  { %397 = vmatpush3.bf16.msra.mxu0 %v396_v19 }
  0x19   :  { %398 = vmatprep.subr.bf16.mxu0 %v434_v3 }
  0x1c   :  { %400 = vmatpush3.bf16.msra.mxu0 %v399_v22 }
  0x1d   :  { %401 = vmatprep.subr.bf16.mxu0 %v434_v3 }
  0x20   :  { %403 = vmatpush3.bf16.msra.mxu0 %v402_v25 }
  0x23   :  { %368 = vmatmul.mubr.f32.vlgmr.msra.gmra.mrb[0].mxu0 %v27_v26 }
  0x8c   :  { %v214_v43 = vpop.permute.xlu0 %213 }
  0xf6   :  { %v117_v29 = vpop.f32.mrb[0].mxu0 }
  0xf7   :  { %v118_v30 = vadd.f32 %v309_v28, %v117_v29  ;;  %v369_v31 = vpop.f32.mrb[1].mxu0 }
  0xf9   :  { %vm121_vm1 = vcmp.ge.f32.partialorder %v118_v30, 0.0  ;;  %v122_v32 = vmul.f32 0.01, %v118_v30 }
  0xfb   :  { %v123_v33 = vsel %vm121_vm1, %v118_v30, %v122_v32 }
  0xfc   :  { %373 = vmatmul.mubr.msk.f32.vlgmr.msra.gmra.mrb[0].mxu1 %vm132_vm2, %v123_v33 }
  0xfd   :  { %377 = vmatprep.mubr.msk.f32.mxu1 %vm435_vm0, %v436_v6 }
 0x1cf   :  { %v202_v37 = vpop.f32.mrb[0].mxu1 }
 0x1d0   :  { %v203_v38 = vadd.f32 %v310_v36, %v202_v37  ;;  %v374_v39 = vpop.f32.mrb[1].mxu1 }
 0x1d2   :  { %vm206_vm3 = vcmp.ge.f32.partialorder %v203_v38, 0.0  ;;  %v207_v40 = vmul.f32 0.01, %v203_v38 }
 0x1d4   :  { %v208_v41 = vsel %vm206_vm3, %v203_v38, %v207_v40 }
 0x1d5   :  { %376 = vmatpush3.xpose.msk.msra.mxu1 %vm216_vm4, %v208_v41 }
 0x1d8   :  { %378 = vmatmul.mubr.msk.f32.vlgmr.msra.gmra.mrb[2].mxu1 %vm216_vm4, %v209_v42 }
 0x2ab   :  { %v289_v44 = vpop.f32.mrb[2].mxu1 }
 0x2ac   :  { %v290_v45 = vadd.f32 %v289_v44, %v214_v43  ;;  %v379_v46 = vpop.f32.mrb[3].mxu1 }
 0x2ae   :  { %294 = vst.msk [vmem:[#allocation2] sm:$0x3] %vm293_vm5, %v290_v45 }
 0x2af   :  { %421 = shalt.err (!%p418_p4)
}
 0x2b0   :  { %s422_s5 = scalar_lea.hbm %s567_s7, 32 }
 0x2b1   :  { %p423_p5 = scmp.ne.s32.totalorder %s567_s7, %s422_s5  ;;  %p426_p6 = scmp.lt.u32.totalorder %s422_s5, %s567_s7 }
 0x2b3   :  { %p428_p7 = pnand %p426_p6, %p423_p5 }
 0x2b5   :  { %431 = shalt.err (!%p428_p7)
}
 0x2b6   :  { %304 = dma.vmem_to_hbm [thread:$0]  %s302_s18, 32, %s567_s7, [#allocation3]  }
 0x2b7   :  { %432 = dma.done.wait [#allocation3], 32  }
 0x2b8   :  { %433 = vsyncadd [#allocation3], 4294967264 }
 0x2b9   :  { %308 = vsyncpa [#allocation3], 1 }

</bundles_post_ra>
